<compile_context>
chip_gen: v7x
topology: tpu7x:2x2x1
jax: 0.10.0
libtpu: 0.0.40
codegen_flags: <defaults>
</compile_context>

<pallas_src>
import math

import jax
import jax.numpy as jnp
import numpy as np
from jax import lax
from jax.experimental import pallas as pl
from jax.experimental.pallas import tpu as pltpu


# ----------------------------------------------------------------------------
# pltpu.roll direction probe (cached).  The 3x3 taps rely on lane rotation;
# this tiny one-off kernel pins down the rotation direction so the tap shifts
# are provably jnp.roll-consistent regardless of backend revision.
# ----------------------------------------------------------------------------
_ROLL_SIGN = None


def _roll_sign():
    """+1 if pltpu.roll(x, s, ax) == jnp.roll(x, s, ax), else -1."""
    global _ROLL_SIGN
    if _ROLL_SIGN is None:
        def probe(x_ref, o_ref):
            o_ref[...] = pltpu.roll(x_ref[...], 1, 1)

        with jax.ensure_compile_time_eval():
            x = jnp.arange(8 * 128, dtype=jnp.int32).reshape(8, 128)
            y = pl.pallas_call(
                probe, out_shape=jax.ShapeDtypeStruct((8, 128), jnp.int32))(x)
            _ROLL_SIGN = 1 if int(y[0, 1]) == 0 else -1
    return _ROLL_SIGN


def _pick_batch_block(total_b, hw, target_rows=1024):
    """Images per grid step: enough lane-rows to amortize per-step overhead,
    while keeping >= 2 grid steps so both v7x TensorCores get work."""
    target = max(1, target_rows // max(hw, 1))
    divisors = [d for d in range(1, total_b + 1) if total_b % d == 0]
    cands = [d for d in divisors if d <= target]
    n_img = cands[-1] if cands else 1
    while n_img > 1 and total_b // n_img < 2:
        smaller = [d for d in divisors if d < n_img]
        n_img = smaller[-1] if smaller else 1
    return n_img


# ----------------------------------------------------------------------------
# Fused ResBlock forward
# ----------------------------------------------------------------------------
def resblock_forward(x, params, *, stride=1, eps=1e-5,
                     compute_dtype=jnp.bfloat16):
    assert stride == 1, "only the module's default stride=1 path is implemented"
    b, t, c, h, w = x.shape
    B = b * t
    HW = h * w
    planes = params["w1"].shape[1]
    assert params["w3"].shape[1] == c, "residual add requires planes == inplanes"

    f32 = jnp.float32
    cdt = jnp.dtype(compute_dtype)

    # ---- fold eval-mode BN into each conv (once, in the wrapper) -----------
    def fold(wt, bnp):
        scale = bnp["gamma"] * lax.rsqrt(bnp["var"] + eps)
        return wt.astype(f32) * scale, bnp["beta"] - bnp["mean"] * scale

    w1f, b1f = fold(params["w1"], params["bn1"])      # (c, planes)
    w2f, b2f = fold(params["w2"], params["bn2"])      # (3, 3, planes, planes) HWIO
    w3f, b3f = fold(params["w3"], params["bn3"])      # (planes, c)

    # Kernel layout: weight-stationary (C_out, C_in) matmuls with the flattened
    # spatial dim in lanes; conv2 taps flattened to (9, C_out, C_in).
    w1k = w1f.T.astype(cdt)                                          # (planes, c)
    w2k = jnp.transpose(w2f, (0, 1, 3, 2)).reshape(9, planes, planes).astype(cdt)
    w3k = w3f.T.astype(cdt)                                          # (c, planes)
    b1k = b1f.reshape(planes, 1).astype(f32)
    b2k = b2f.reshape(planes, 1).astype(f32)
    b3k = b3f.reshape(c, 1).astype(f32)

    # 0/1 edge-validity masks for the 3x3 taps (tap k = ky*3 + kx), built on
    # the host so the kernel does no integer div/mod.
    rows = np.arange(HW) // w
    cols = np.arange(HW) % w
    masks_np = np.zeros((9, 1, HW), np.float32)
    for k in range(9):
        dy, dx = k // 3 - 1, k % 3 - 1
        masks_np[k, 0] = ((rows + dy >= 0) & (rows + dy < h) &
                          (cols + dx >= 0) & (cols + dx < w))
    masks = jnp.asarray(masks_np).astype(cdt)

    # PyTorch does x.view(b*t, c, h, w); we additionally flatten h*w so the
    # spatial dim rides in lanes.  Both are free reshapes: no HBM copy, no
    # transpose pass, no channel padding.
    xf = x.reshape(B, c, HW)

    n_img = _pick_batch_block(B, HW)
    sgn = _roll_sign()

    def kernel(x_ref, w1_ref, b1_ref, w2_ref, b2_ref, w3_ref, b3_ref, m_ref,
               o_ref):
        for n in range(n_img):                      # unrolled: n_img is small
            xv = x_ref[n]                           # (c, HW), lane-dense
            x_res = xv.astype(f32)                  # residual path stays f32
            x_c = xv.astype(cdt)                    # MXU operand
            # conv1 (1x1) + folded BN + ReLU
            y1 = jnp.dot(w1_ref[...], x_c, preferred_element_type=f32)
            y1 = jnp.maximum(y1 + b1_ref[...], 0.0)
            y1c = y1.astype(cdt)
            # conv2 (3x3, stride 1, pad 1): each tap = lane-roll of the
            # flattened spatial axis (XLU) + 0/1 edge mask (VPU), feeding one
            # chained f32 accumulator.
            acc = None
            for k in range(9):
                off = (k // 3 - 1) * w + (k % 3 - 1)
                if off == 0:
                    tap = y1c
                else:
                    tap = pltpu.roll(y1c, (-sgn * off) % HW, 1) * m_ref[k]
                d = jnp.dot(w2_ref[k], tap, preferred_element_type=f32)
                acc = d if acc is None else acc + d
            y2 = jnp.maximum(acc + b2_ref[...], 0.0)
            # conv3 (1x1) + folded BN + residual + ReLU
            y3 = jnp.dot(w3_ref[...], y2.astype(cdt), preferred_element_type=f32)
            o_ref[n] = jnp.maximum(y3 + b3_ref[...] + x_res,
                                   0.0).astype(o_ref.dtype)

    # Grid-invariant operands (weights / biases / masks): single-buffered.
    def const_spec(shape):
        nd = len(shape)
        return pl.BlockSpec(shape, lambda i, _nd=nd: (0,) * _nd,
                            pipeline_mode=pl.Buffered(1))

    act_spec = pl.BlockSpec((n_img, c, HW), lambda i: (i, 0, 0))

    out = pl.pallas_call(
        kernel,
        out_shape=jax.ShapeDtypeStruct((B, c, HW), x.dtype),
        grid=(B // n_img,),
        in_specs=[act_spec,
                  const_spec((planes, c)), const_spec((planes, 1)),
                  const_spec((9, planes, planes)), const_spec((planes, 1)),
                  const_spec((c, planes)), const_spec((c, 1)),
                  const_spec((9, 1, HW))],
        out_specs=act_spec,
        compiler_params=pltpu.CompilerParams(
            dimension_semantics=("parallel",),
            vmem_limit_bytes=32 * 1024 * 1024),
    )(xf, w1k, b1k, w2k, b2k, w3k, b3k, masks)

    # PyTorch: out.view(b, -1, c, h, w)  (again a free reshape)
    return out.reshape(b, t, c, h, w)


# ----------------------------------------------------------------------------
# Parameter init (conv weights channels-last / HWIO, BN with running stats)
# ----------------------------------------------------------------------------
def init_params(key, inplanes, planes):
    ks = jax.random.split(key, 15)

    def conv(k, shape, fan_in):
        bound = 1.0 / math.sqrt(fan_in)
        return jax.random.uniform(k, shape, jnp.float32, -bound, bound)

    def bn(k1, k2, k3, k4, ch):
        return dict(
            gamma=jax.random.uniform(k1, (ch,), jnp.float32, 0.5, 1.5),
            beta=0.1 * jax.random.normal(k2, (ch,), jnp.float32),
            mean=0.1 * jax.random.normal(k3, (ch,), jnp.float32),
            var=jax.random.uniform(k4, (ch,), jnp.float32, 0.5, 1.5),
        )

    return dict(
        w1=conv(ks[0], (inplanes, planes), inplanes),          # 1x1: (Cin, Cout)
        w2=conv(ks[1], (3, 3, planes, planes), 9 * planes),    # 3x3: HWIO
        w3=conv(ks[2], (planes, inplanes), planes),            # 1x1: (Cin, Cout)
        bn1=bn(ks[3], ks[4], ks[5], ks[6], planes),
        bn2=bn(ks[7], ks[8], ks[9], ks[10], planes),
        bn3=bn(ks[11], ks[12], ks[13], ks[14], inplanes),
    )


# ----------------------------------------------------------------------------
# Pure-JAX reference (mirrors the PyTorch forward, BN in eval mode, unfolded)
# ----------------------------------------------------------------------------
def resblock_reference(x, params, eps=1e-5):
    b, t, c, h, w = x.shape
    xb = x.reshape(b * t, c, h, w).astype(jnp.float32)
    xcl = jnp.transpose(xb, (0, 2, 3, 1))                       # NHWC

    def bn(y, p):
        return (y - p["mean"]) * lax.rsqrt(p["var"] + eps) * p["gamma"] + p["beta"]

    y = jnp.einsum("nhwc,cp->nhwp", xcl, params["w1"])
    y = jax.nn.relu(bn(y, params["bn1"]))
    y = lax.conv_general_dilated(y, params["w2"], window_strides=(1, 1),
                                 padding="SAME",
                                 dimension_numbers=("NHWC", "HWIO", "NHWC"))
    y = jax.nn.relu(bn(y, params["bn2"]))
    y = jnp.einsum("nhwp,pq->nhwq", y, params["w3"])
    y = bn(y, params["bn3"])
    out = jax.nn.relu(y + xcl)
    out = jnp.transpose(out, (0, 3, 1, 2)).reshape(b, t, c, h, w)
    return out


if __name__ == "__main__":
    key = jax.random.PRNGKey(0)
    kx, kp = jax.random.split(key)

    b, t, c, h, w = 2, 2, 8, 16, 16          # x: (b, t, c, h, w)
    inplanes = planes = c                    # no-downsample residual path

    x = jax.random.normal(kx, (b, t, c, h, w), jnp.float32)
    params = init_params(kp, inplanes, planes)

    z_ref = resblock_reference(x, params)

    # Exact-math run (f32 MXU operands): tight structural / numerical check.
    z_f32 = jax.block_until_ready(
        resblock_forward(x, params, compute_dtype=jnp.float32))
    assert z_f32.shape == (b, t, c, h, w)
    np.testing.assert_allclose(np.asarray(z_f32), np.asarray(z_ref),
                               rtol=1e-4, atol=1e-4)

    # Default fast path: bf16 MXU operands, f32 accumulation / residual math.
    z_bf16 = jax.block_until_ready(resblock_forward(x, params))
    assert z_bf16.shape == (b, t, c, h, w)
    np.testing.assert_allclose(np.asarray(z_bf16), np.asarray(z_ref),
                               rtol=1e-1, atol=2e-1)

    print("KERNEL_OK")
</pallas_src>

<mosaic_0001>
module attributes {stable_mosaic.version = 11 : i64} {
  func.func @probe(%arg0: memref<8x128xi32, #tpu.memory_space<vmem>>, %arg1: memref<8x128xi32, #tpu.memory_space<vmem>>) attributes {dimension_semantics = [], scalar_prefetch = 0 : i64, scratch_operands = 0 : i64, tpu.core_type = #tpu.core_type<tc>} {
    %c0 = arith.constant 0 : index
    %c0_0 = arith.constant 0 : index
    %0 = vector.load %arg0[%c0, %c0_0] : memref<8x128xi32, #tpu.memory_space<vmem>>, vector<8x128xi32>
    %c1_i32 = arith.constant 1 : i32
    %1 = tpu.dynamic_rotate %0 by %c1_i32 dim 1 : vector<8x128xi32>, i32 -> vector<8x128xi32>
    %c0_1 = arith.constant 0 : index
    %c0_2 = arith.constant 0 : index
    %2 = vector.load %arg1[%c0_1, %c0_2] : memref<8x128xi32, #tpu.memory_space<vmem>>, vector<8x128xi32>
    tpu.vector_store %arg1[%c0_1, %c0_2], %1 {strides = array<i32>} : memref<8x128xi32, #tpu.memory_space<vmem>>, vector<8x128xi32>,
    return
  }
}

</mosaic_0001>

<bundles_post_ra>
// kernel: tpu_custom_call.1
= control target key start
LH: loop header
LB: loop body
LE: loop exit
PB: predicated region body
PF: predicated region fallthrough
CT: control target
= control target key end

     0   :  { %6 = vsyncpa [#allocation3], 0  ;;  %s128_s0 = inlined_call_operand.hbm [shape: s32[8,128], index: 0, kind: input, shape index: {}]   ;;  %s129_s1 = inlined_call_operand.hbm [shape: s32[8,128], index: 1, kind: output, shape index: {}]  }
   0x1   :  { %7 = vsyncpa [#allocation4], 0  ;;  %s91_s6 = smov [#allocation2]   ;;  %s43_s10 = scalar_lea.hbm %s128_s0, 128 }
   0x2   :  { %s14_s7 = sshll.u32 %s91_s6, 4  ;;  %p44_p0 = scmp.ne.s32.totalorder %s128_s0, %s43_s10  ;;  %s15_s7 = int_to_ptr.vmem [resolvable:$true] %s14_s7 }
   0x3   :  { %p47_p1 = scmp.lt.u32.totalorder %s43_s10, %s128_s0 }
   0x5   :  { %p49_p2 = pnand %p47_p1, %p44_p0 }
   0x7   :  { %52 = shalt.err (!%p49_p2)
}
   0x8   :  { %s53_s15 = scalar_lea.vmem %s15_s7, 128  ;;  %p58_p4 = scmp.lt.s32.totalorder %s15_s7, %s15_s7 }
   0x9   :  { %p54_p3 = scmp.ne.s32.totalorder %s15_s7, %s53_s15  ;;  %p59_p5 = scmp.lt.s32.totalorder %s53_s15, %s53_s15 }
   0xb   :  { %p60_p6 = por %p59_p5, %p58_p4 }
   0xd   :  { %p61_p7 = pnand %p60_p6, %p54_p3 }
   0xf   :  { %64 = shalt.err (!%p61_p7)
}
  0x10   :  { %17 = dma.hbm_to_vmem [thread:$0]  %s128_s0, 128, %s15_s7, [#allocation3]  }
  0x11   :  { %87 = dma.done.wait [#allocation3], 128  }
  0x12   :  { %88 = vsyncadd [#allocation3], 4294967168  ;;  %v21_v0 = vld [vmem:[#allocation2] sm:$0xff]  ;;  %s92_s18 = smov 1   ;;  %s93_s19 = smov [#allocation5]  }
  0x13   :  { %22 = vrot.lane.b32.xlu0 %v21_v0, %s92_s18  ;;  %s31_s20 = sshll.u32 %s93_s19, 4  ;;  %s32_s20 = int_to_ptr.vmem [resolvable:$true] %s31_s20 }
  0x14   :  { %s65_s21 = scalar_lea.vmem %s32_s20, 128  ;;  %p70_p9 = scmp.lt.s32.totalorder %s32_s20, %s32_s20 }
  0x15   :  { %p66_p8 = scmp.ne.s32.totalorder %s32_s20, %s65_s21  ;;  %p71_p10 = scmp.lt.s32.totalorder %s65_s21, %s65_s21 }
  0x17   :  { %p72_p11 = por %p71_p10, %p70_p9 }
  0x19   :  { %p73_p12 = pnand %p72_p11, %p66_p8 }
  0x85   :  { %v23_v1 = vpop.permute.xlu0 %22 }
  0x86   :  { %24 = vst [vmem:[#allocation5] sm:$0xff] %v23_v1 }
  0x87   :  { %76 = shalt.err (!%p73_p12)
}
  0x88   :  { %s77_s0 = scalar_lea.hbm %s129_s1, 128 }
  0x89   :  { %p78_p13 = scmp.ne.s32.totalorder %s129_s1, %s77_s0  ;;  %p81_p0 = scmp.lt.u32.totalorder %s77_s0, %s129_s1 }
  0x8b   :  { %p83_p1 = pnand %p81_p0, %p78_p13 }
  0x8d   :  { %86 = shalt.err (!%p83_p1)
}
  0x8e   :  { %34 = dma.vmem_to_hbm [thread:$0]  %s32_s20, 128, %s129_s1, [#allocation4]  }
  0x8f   :  { %89 = dma.done.wait [#allocation4], 128  }
  0x90   :  { %90 = vsyncadd [#allocation4], 4294967168 }
  0x91   :  { %38 = vsyncpa [#allocation3], 1 }
  0x92   :  { %39 = vsyncpa [#allocation4], 1 }

</bundles_post_ra>
